<compile_context>
chip_gen: v6e
topology: v6e:2x2x1
jax: 0.10.0
libtpu: 0.0.40
codegen_flags: <defaults>
</compile_context>

<pallas_src>
import functools

import jax
import jax.numpy as jnp
from jax.experimental import pallas as pl
from jax.experimental.pallas import tpu as pltpu


def _mfa_kernel(x_ref, s_ref, w1t_ref, b1_ref, w2t_ref, b2_ref, o_ref, *,
                channels, seq_len):
    """One batch tile.

    x_ref / o_ref : (TB, C*L)  row b = batch b, channel-major L-segments
    s_ref         : (C*L, C)   0/1 channel-segment pooling matrix (x dtype)
    w1t_ref       : (C, H)     conv1.weight[:, :, 0].T   (f32)
    b1_ref        : (1, H)     conv1.bias                (f32)
    w2t_ref       : (H, C)     conv2.weight[:, :, 0].T   (f32)
    b2_ref        : (1, C)     conv2.bias                (f32)
    """
    inv_l = jnp.float32(1.0 / seq_len)

    # Global average pool over each channel's L-segment, on the MXU (idle
    # otherwise); accumulate in f32 and scale by 1/L afterwards so the 0/1
    # pooling matrix is exact in any dtype.  Result is already (TB, C).
    gap = jnp.dot(x_ref[...], s_ref[...],
                  preferred_element_type=jnp.float32) * inv_l        # (TB, C)

    # 1x1-conv squeeze/excite MLP against the raw small weights.
    h = jnp.dot(gap, w1t_ref[...], preferred_element_type=jnp.float32)
    h = jnp.maximum(h + b1_ref[...], 0.0)                            # (TB, H)
    z = jnp.dot(h, w2t_ref[...], preferred_element_type=jnp.float32)
    alpha = jax.nn.sigmoid(z + b2_ref[...])                          # (TB, C)

    # Gate: each channel's contiguous L-segment scaled by its alpha column.
    # Static slices (C is small); x stays in its native dtype throughout.
    for c in range(channels):
        a_c = alpha[:, c:c + 1].astype(x_ref.dtype)                  # (TB, 1)
        seg = pl.ds(c * seq_len, seq_len)
        o_ref[:, seg] = x_ref[:, seg] * a_c


def _vmem_capacity_bytes():
    """Physical VMEM per TensorCore; conservative v7x fallback (64 MiB)."""
    try:
        cap = int(pltpu.get_tpu_info().vmem_capacity_bytes)
        if cap > 0:
            return cap
    except Exception:
        pass
    return 64 * 1024 * 1024


def _pick_batch_tile(B, row_bytes, usable_bytes):
    """Largest divisor TB of B such that
         * TB % 8 == 0 (sublane rule) or TB == B (full-array block), and
         * 2 x-buffers + 2 out-buffers of TB rows fit `usable_bytes`,
       preferring an even (ideally >= 4) grid-step count so the 'parallel'
       axis splits evenly across v7x's two TensorCores."""
    max_tb = max(1, usable_bytes // max(1, 4 * row_bytes))
    cands = [d for d in range(1, B + 1)
             if B % d == 0 and (d % 8 == 0 or d == B)]
    in_budget = [d for d in cands if d <= max_tb]
    pool = in_budget if in_budget else [min(cands)]
    even4 = [d for d in pool if (B // d) % 2 == 0 and B // d >= 4]
    even2 = [d for d in pool if (B // d) % 2 == 0]
    multi = [d for d in pool if B // d >= 2]
    for subset in (even4, even2, multi):
        if subset:
            return max(subset)
    return max(pool)


def mfa_block(x, w1, b1, w2, b2, *, block_batch=None, gate_in_place=False):
    """x: (B, C, L); w1: (H, C); b1: (H,); w2: (C, H); b2: (C,)."""
    B, C, L = x.shape
    H = w1.shape[0]
    itemsize = x.dtype.itemsize
    CL = C * L

    f32 = jnp.float32
    # Tiny per-call constants; none of them scale with the batch tile size.
    s_pool = jnp.kron(jnp.eye(C, dtype=f32),
                      jnp.ones((L, 1), f32)).astype(x.dtype)          # (C*L, C)
    w1t = jnp.asarray(w1, f32).T                                      # (C, H)
    b1r = jnp.asarray(b1, f32).reshape(1, H)                          # (1, H)
    w2t = jnp.asarray(w2, f32).T                                      # (H, C)
    b2r = jnp.asarray(b2, f32).reshape(1, C)                          # (1, C)

    param_bytes = int(s_pool.size * s_pool.dtype.itemsize
                      + (w1t.size + b1r.size + w2t.size + b2r.size) * 4)

    vmem_cap = _vmem_capacity_bytes()
    # Budget for the pipelined buffers: params are double-buffered too (they
    # use constant block indices so they are fetched once, but still occupy
    # two slots under the default pipelining).
    usable = max(1, int(vmem_cap * 0.85) - 2 * param_bytes)

    row_bytes = CL * itemsize
    tb = block_batch if block_batch is not None else _pick_batch_tile(
        B, row_bytes, usable)
    if B % tb != 0:
        raise ValueError("block_batch must divide the batch size")
    if tb % 8 != 0 and tb != B:
        raise ValueError("block_batch must be a multiple of 8 (sublane rule) "
                         "or equal to the full batch")
    num_steps = B // tb

    tile_bytes = tb * row_bytes
    vmem_need = 4 * tile_bytes + 2 * param_bytes        # 2x in + 2x out bufs
    vmem_limit = int(min(int(vmem_cap * 0.9),
                         max(vmem_need + vmem_need // 4, 16 * 1024 * 1024)))
    vmem_limit = max(vmem_limit, 1 << 20)

    cost = pl.CostEstimate(
        flops=int(2 * B * CL * C            # MXU pooling matmul
                  + 4 * B * C * H           # squeeze/excite MLP
                  + B * CL),                # gating multiply
        transcendentals=int(B * C),
        bytes_accessed=int(2 * B * CL * itemsize + 2 * param_bytes),
    )

    # Lane-dense 2-D view: rows are batches, lanes are C*L.
    x2 = x.reshape(B, CL)

    kernel = functools.partial(_mfa_kernel, channels=C, seq_len=L)

    extra = {}
    if gate_in_place:
        # Alias the gated output onto x's buffer (XLA copies if x is live).
        extra["input_output_aliases"] = {0: 0}

    out2 = pl.pallas_call(
        kernel,
        out_shape=jax.ShapeDtypeStruct((B, CL), x.dtype),
        grid=(num_steps,),
        in_specs=[
            pl.BlockSpec((tb, CL), lambda i: (i, 0)),    # x tile
            pl.BlockSpec((CL, C), lambda i: (0, 0)),     # pooling matrix
            pl.BlockSpec((C, H), lambda i: (0, 0)),      # w1^T
            pl.BlockSpec((1, H), lambda i: (0, 0)),      # b1
            pl.BlockSpec((H, C), lambda i: (0, 0)),      # w2^T
            pl.BlockSpec((1, C), lambda i: (0, 0)),      # b2
        ],
        out_specs=pl.BlockSpec((tb, CL), lambda i: (i, 0)),
        compiler_params=pltpu.CompilerParams(
            dimension_semantics=("parallel",),
            vmem_limit_bytes=vmem_limit,
        ),
        cost_estimate=cost,
        **extra,
    )(x2, s_pool, w1t, b1r, w2t, b2r)

    return out2.reshape(B, C, L)


def mfa_block_ref(x, w1, b1, w2, b2):
    # Plain-JAX reference mirroring the PyTorch forward.
    gap = jnp.mean(x, axis=-1)                              # (B, C)
    h = jnp.maximum(gap @ w1.T + b1, 0.0)                   # (B, H)
    alpha = jax.nn.sigmoid(h @ w2.T + b2)                   # (B, C)
    return alpha[:, :, None] * x


if __name__ == "__main__":
    # Shapes consistent with the module: batch=2, input_dim=4, seq=16, hidden=32.
    B, C, L, H = 2, 4, 16, 32

    key = jax.random.PRNGKey(0)
    kx, k1, k2, k3, k4 = jax.random.split(key, 5)

    x = jax.random.normal(kx, (B, C, L), dtype=jnp.float32)
    w1 = 0.1 * jax.random.normal(k1, (H, C), dtype=jnp.float32)   # conv1.weight[:, :, 0]
    b1 = 0.1 * jax.random.normal(k2, (H,), dtype=jnp.float32)     # conv1.bias
    w2 = 0.1 * jax.random.normal(k3, (C, H), dtype=jnp.float32)   # conv2.weight[:, :, 0]
    b2 = 0.1 * jax.random.normal(k4, (C,), dtype=jnp.float32)     # conv2.bias

    # Tolerance covers MXU f32 multi-pass rounding differences between the
    # in-kernel dots and the XLA reference; structural bugs would be O(0.1+).
    ATOL = RTOL = 2e-3

    out = jax.block_until_ready(mfa_block(x, w1, b1, w2, b2))
    ref = jax.block_until_ready(mfa_block_ref(x, w1, b1, w2, b2))
    assert out.shape == (B, C, L)
    assert jnp.allclose(out, ref, atol=ATOL, rtol=RTOL), "mismatch vs reference (toy)"

    # Larger case: lane-dense C*L = 1024 lanes and a 4-step 'parallel' grid
    # (BlockSpec pipelining + even split across v7x's two TensorCores).
    B2, L2 = 32, 256
    x_big = jax.random.normal(kx, (B2, C, L2), dtype=jnp.float32)
    out_big = jax.block_until_ready(mfa_block(x_big, w1, b1, w2, b2))
    ref_big = jax.block_until_ready(mfa_block_ref(x_big, w1, b1, w2, b2))
    assert out_big.shape == (B2, C, L2)
    assert jnp.allclose(out_big, ref_big, atol=ATOL, rtol=RTOL), "mismatch vs reference (big)"

    print("KERNEL_OK")
</pallas_src>

<mosaic_0001>
module attributes {stable_mosaic.version = 11 : i64} {
  func.func @_mfa_kernel(%arg0: i32, %arg1: memref<2x64xf32, #tpu.memory_space<vmem>>, %arg2: memref<64x4xf32, #tpu.memory_space<vmem>>, %arg3: memref<4x32xf32, #tpu.memory_space<vmem>>, %arg4: memref<1x32xf32, #tpu.memory_space<vmem>>, %arg5: memref<32x4xf32, #tpu.memory_space<vmem>>, %arg6: memref<1x4xf32, #tpu.memory_space<vmem>>, %arg7: memref<2x64xf32, #tpu.memory_space<vmem>>) attributes {dimension_semantics = [#tpu.dimension_semantics<parallel>], iteration_bounds = array<i64: 1>, scalar_prefetch = 0 : i64, scratch_operands = 0 : i64, tpu.core_type = #tpu.core_type<tc>, window_params = [{transform_indices = @transform_0, window_bounds = array<i64: 2, 64>}, {pipeline_mode = #tpu.pipeline_mode<synchronous>, transform_indices = @transform_1, window_bounds = array<i64: 64, 4>}, {pipeline_mode = #tpu.pipeline_mode<synchronous>, transform_indices = @transform_2, window_bounds = array<i64: 4, 32>}, {pipeline_mode = #tpu.pipeline_mode<synchronous>, transform_indices = @transform_3, window_bounds = array<i64: 1, 32>}, {pipeline_mode = #tpu.pipeline_mode<synchronous>, transform_indices = @transform_4, window_bounds = array<i64: 32, 4>}, {pipeline_mode = #tpu.pipeline_mode<synchronous>, transform_indices = @transform_5, window_bounds = array<i64: 1, 4>}, {transform_indices = @transform_6, window_bounds = array<i64: 2, 64>}]} {
    %c0 = arith.constant 0 : index
    %c0_0 = arith.constant 0 : index
    %0 = vector.load %arg1[%c0, %c0_0] : memref<2x64xf32, #tpu.memory_space<vmem>>, vector<2x64xf32>
    %c0_1 = arith.constant 0 : index
    %c0_2 = arith.constant 0 : index
    %1 = vector.load %arg2[%c0_1, %c0_2] : memref<64x4xf32, #tpu.memory_space<vmem>>, vector<64x4xf32>
    %cst = arith.constant dense<0.000000e+00> : vector<2x4xf32>
    %2 = tpu.matmul %0, %1, %cst {dimension_numbers = #tpu.dot_dimension_numbers<[1], [0], [0], [1], [0, 0, 1, 1], [], []>} : vector<2x64xf32>, vector<64x4xf32>, vector<2x4xf32> -> vector<2x4xf32>
    %cst_3 = arith.constant 6.250000e-02 : f32
    %3 = vector.broadcast %cst_3 : f32 to vector<2x4xf32>
    %4 = arith.mulf %2, %3 : vector<2x4xf32>
    %c0_4 = arith.constant 0 : index
    %c0_5 = arith.constant 0 : index
    %5 = vector.load %arg3[%c0_4, %c0_5] : memref<4x32xf32, #tpu.memory_space<vmem>>, vector<4x32xf32>
    %cst_6 = arith.constant dense<0.000000e+00> : vector<2x32xf32>
    %6 = tpu.matmul %4, %5, %cst_6 {dimension_numbers = #tpu.dot_dimension_numbers<[1], [0], [0], [1], [0, 0, 1, 1], [], []>} : vector<2x4xf32>, vector<4x32xf32>, vector<2x32xf32> -> vector<2x32xf32>
    %c0_7 = arith.constant 0 : index
    %c0_8 = arith.constant 0 : index
    %7 = vector.load %arg4[%c0_7, %c0_8] : memref<1x32xf32, #tpu.memory_space<vmem>>, vector<1x32xf32>
    %8 = vector.broadcast %7 : vector<1x32xf32> to vector<2x32xf32>
    %9 = arith.addf %6, %8 : vector<2x32xf32>
    %cst_9 = arith.constant 0.000000e+00 : f32
    %10 = vector.broadcast %cst_9 : f32 to vector<2x32xf32>
    %11 = arith.maximumf %9, %10 : vector<2x32xf32>
    %c0_10 = arith.constant 0 : index
    %c0_11 = arith.constant 0 : index
    %12 = vector.load %arg5[%c0_10, %c0_11] : memref<32x4xf32, #tpu.memory_space<vmem>>, vector<32x4xf32>
    %cst_12 = arith.constant dense<0.000000e+00> : vector<2x4xf32>
    %13 = tpu.matmul %11, %12, %cst_12 {dimension_numbers = #tpu.dot_dimension_numbers<[1], [0], [0], [1], [0, 0, 1, 1], [], []>} : vector<2x32xf32>, vector<32x4xf32>, vector<2x4xf32> -> vector<2x4xf32>
    %c0_13 = arith.constant 0 : index
    %c0_14 = arith.constant 0 : index
    %14 = vector.load %arg6[%c0_13, %c0_14] : memref<1x4xf32, #tpu.memory_space<vmem>>, vector<1x4xf32>
    %15 = vector.broadcast %14 : vector<1x4xf32> to vector<2x4xf32>
    %16 = arith.addf %13, %15 : vector<2x4xf32>
    %17 = arith.negf %16 : vector<2x4xf32>
    %18 = math.exp %17 : vector<2x4xf32>
    %cst_15 = arith.constant 1.000000e+00 : f32
    %19 = vector.broadcast %cst_15 : f32 to vector<2x4xf32>
    %20 = arith.addf %19, %18 : vector<2x4xf32>
    %21 = arith.divf %19, %20 : vector<2x4xf32>
    %22 = vector.extract_strided_slice %21 {offsets = [0, 0], sizes = [2, 1], strides = [1, 1]} : vector<2x4xf32> to vector<2x1xf32>
    %c0_16 = arith.constant 0 : index
    %c0_17 = arith.constant 0 : index
    %23 = vector.load %arg1[%c0_16, %c0_17] : memref<2x64xf32, #tpu.memory_space<vmem>>, vector<2x16xf32>
    %24 = vector.broadcast %22 : vector<2x1xf32> to vector<2x16xf32>
    %25 = arith.mulf %23, %24 : vector<2x16xf32>
    %c0_18 = arith.constant 0 : index
    %c0_19 = arith.constant 0 : index
    %26 = vector.load %arg7[%c0_18, %c0_19] : memref<2x64xf32, #tpu.memory_space<vmem>>, vector<2x16xf32>
    tpu.vector_store %arg7[%c0_18, %c0_19], %25 {strides = array<i32>} : memref<2x64xf32, #tpu.memory_space<vmem>>, vector<2x16xf32>,
    %27 = vector.extract_strided_slice %21 {offsets = [0, 1], sizes = [2, 1], strides = [1, 1]} : vector<2x4xf32> to vector<2x1xf32>
    %c0_20 = arith.constant 0 : index
    %c16 = arith.constant 16 : index
    %28 = vector.load %arg1[%c0_20, %c16] : memref<2x64xf32, #tpu.memory_space<vmem>>, vector<2x16xf32>
    %29 = vector.broadcast %27 : vector<2x1xf32> to vector<2x16xf32>
    %30 = arith.mulf %28, %29 : vector<2x16xf32>
    %c0_21 = arith.constant 0 : index
    %c16_22 = arith.constant 16 : index
    %31 = vector.load %arg7[%c0_21, %c16_22] : memref<2x64xf32, #tpu.memory_space<vmem>>, vector<2x16xf32>
    tpu.vector_store %arg7[%c0_21, %c16_22], %30 {strides = array<i32>} : memref<2x64xf32, #tpu.memory_space<vmem>>, vector<2x16xf32>,
    %32 = vector.extract_strided_slice %21 {offsets = [0, 2], sizes = [2, 1], strides = [1, 1]} : vector<2x4xf32> to vector<2x1xf32>
    %c0_23 = arith.constant 0 : index
    %c32 = arith.constant 32 : index
    %33 = vector.load %arg1[%c0_23, %c32] : memref<2x64xf32, #tpu.memory_space<vmem>>, vector<2x16xf32>
    %34 = vector.broadcast %32 : vector<2x1xf32> to vector<2x16xf32>
    %35 = arith.mulf %33, %34 : vector<2x16xf32>
    %c0_24 = arith.constant 0 : index
    %c32_25 = arith.constant 32 : index
    %36 = vector.load %arg7[%c0_24, %c32_25] : memref<2x64xf32, #tpu.memory_space<vmem>>, vector<2x16xf32>
    tpu.vector_store %arg7[%c0_24, %c32_25], %35 {strides = array<i32>} : memref<2x64xf32, #tpu.memory_space<vmem>>, vector<2x16xf32>,
    %37 = vector.extract_strided_slice %21 {offsets = [0, 3], sizes = [2, 1], strides = [1, 1]} : vector<2x4xf32> to vector<2x1xf32>
    %c0_26 = arith.constant 0 : index
    %c48 = arith.constant 48 : index
    %38 = vector.load %arg1[%c0_26, %c48] : memref<2x64xf32, #tpu.memory_space<vmem>>, vector<2x16xf32>
    %39 = vector.broadcast %37 : vector<2x1xf32> to vector<2x16xf32>
    %40 = arith.mulf %38, %39 : vector<2x16xf32>
    %c0_27 = arith.constant 0 : index
    %c48_28 = arith.constant 48 : index
    %41 = vector.load %arg7[%c0_27, %c48_28] : memref<2x64xf32, #tpu.memory_space<vmem>>, vector<2x16xf32>
    tpu.vector_store %arg7[%c0_27, %c48_28], %40 {strides = array<i32>} : memref<2x64xf32, #tpu.memory_space<vmem>>, vector<2x16xf32>,
    return
  }
  func.func @transform_0(%arg0: i32) -> (i32, i32) {
    %c0_i32 = arith.constant 0 : i32
    %c0_i32_0 = arith.constant 0 : i32
    return %arg0, %c0_i32 : i32, i32
  }
  func.func @transform_1(%arg0: i32) -> (i32, i32) {
    %c0_i32 = arith.constant 0 : i32
    %c0_i32_0 = arith.constant 0 : i32
    %c0_i32_1 = arith.constant 0 : i32
    return %c0_i32, %c0_i32_0 : i32, i32
  }
  func.func @transform_2(%arg0: i32) -> (i32, i32) {
    %c0_i32 = arith.constant 0 : i32
    %c0_i32_0 = arith.constant 0 : i32
    %c0_i32_1 = arith.constant 0 : i32
    return %c0_i32, %c0_i32_0 : i32, i32
  }
  func.func @transform_3(%arg0: i32) -> (i32, i32) {
    %c0_i32 = arith.constant 0 : i32
    %c0_i32_0 = arith.constant 0 : i32
    %c0_i32_1 = arith.constant 0 : i32
    return %c0_i32, %c0_i32_0 : i32, i32
  }
  func.func @transform_4(%arg0: i32) -> (i32, i32) {
    %c0_i32 = arith.constant 0 : i32
    %c0_i32_0 = arith.constant 0 : i32
    %c0_i32_1 = arith.constant 0 : i32
    return %c0_i32, %c0_i32_0 : i32, i32
  }
  func.func @transform_5(%arg0: i32) -> (i32, i32) {
    %c0_i32 = arith.constant 0 : i32
    %c0_i32_0 = arith.constant 0 : i32
    %c0_i32_1 = arith.constant 0 : i32
    return %c0_i32, %c0_i32_0 : i32, i32
  }
  func.func @transform_6(%arg0: i32) -> (i32, i32) {
    %c0_i32 = arith.constant 0 : i32
    %c0_i32_0 = arith.constant 0 : i32
    return %arg0, %c0_i32 : i32, i32
  }
}

</mosaic_0001>

<bundles_post_ra>
// kernel: tpu_custom_call.1
= control target key start
LH: loop header
LB: loop body
LE: loop exit
PB: predicated region body
PF: predicated region fallthrough
CT: control target
= control target key end

     0   :  { %v428_v1 = vmov 0.0   ;;  %vm429_vm0 = vmmov 0   ;;  %s533_s0 = inlined_call_operand.vmem [shape: f32[2,64], index: 0, kind: input, shape index: {}]   ;;  %s534_s1 = inlined_call_operand.vmem [shape: f32[64,4], index: 1, kind: input, shape index: {}]   ;;  %s535_s2 = inlined_call_operand.vmem [shape: f32[4,32], index: 2, kind: input, shape index: {}]   ;;  %s536_s3 = inlined_call_operand.vmem [shape: f32[1,32], index: 3, kind: input, shape index: {}]   ;;  %s537_s4 = inlined_call_operand.vmem [shape: f32[32,4], index: 4, kind: input, shape index: {}]   ;;  %s538_s5 = inlined_call_operand.vmem [shape: f32[1,4], index: 5, kind: input, shape index: {}]   ;;  %s539_s6 = inlined_call_operand.hbm [shape: f32[2,64], index: 6, kind: output, shape index: {}]  }
   0x1   :  { %v32_v0 = vld [vmem:[%s534_s1 + $0x38] sm:$0xff]  ;;  %355 = vmatprep.subr.mxu0 %v428_v1  ;;  %v31_v2 = vld [vmem:[%s534_s1 + $0x30] sm:$0xff]  ;;  %371 = vmatprep.mubr.msk.f32.mxu0 %vm429_vm0, %v428_v1  ;;  %v30_v3 = vld [vmem:[%s534_s1 + $0x28] sm:$0xff] }
   0x2   :  { %356 = vmatpush3.msra.mxu0 %v32_v0  ;;  %374 = vmatprep.subr.mxu1 %v428_v1 }
   0x3   :  { %357 = vmatprep.subr.mxu0 %v428_v1  ;;  %376 = vmatprep.mubr.msk.f32.mxu1 %vm429_vm0, %v428_v1 }
   0x4   :  { %11 = vsyncpa [#allocation3], 0  ;;  %358 = vmatpush3.msra.mxu0 %v31_v2  ;;  %v29_v4 = vld [vmem:[%s534_s1 + $0x20] sm:$0xff]  ;;  %v28_v5 = vld [vmem:[%s534_s1 + $0x18] sm:$0xff]  ;;  %vm33_vm1 = vcmask 523264   ;;  %vm120_vm2 = vcmask 1043456  }
   0x5   :  { %359 = vmatprep.subr.mxu0 %v428_v1  ;;  %v27_v6 = vld [vmem:[%s534_s1 + $0x10] sm:$0xff]  ;;  %v26_v7 = vld [vmem:[%s534_s1 + $0x8] sm:$0xff]  ;;  %v25_v8 = vld [vmem:[%s534_s1] sm:$0xff]  ;;  %vm116_vm3 = vcmask 31744   ;;  %vm206_vm4 = vcmask 261120   ;;  %v430_v23 = vmov 2  }
   0x6   :  { %360 = vmatpush3.msra.mxu0 %v30_v3  ;;  %v24_v9 = vld [vmem:[%s533_s0] sm:$0x3]  ;;  %v198_v13 = vld [vmem:[%s537_s4 + $0x18] sm:$0xff]  ;;  %v197_v15 = vld [vmem:[%s537_s4 + $0x10] sm:$0xff]  ;;  %399 = vset.pattern.permute.xlu1 %v430_v23  ;;  %v431_v24 = vmov 0   ;;  %v432_v33 = vmov 3  }
   0x7   :  { %361 = vmatprep.subr.mxu0 %v428_v1  ;;  %v108_v10 = vld [vmem:[%s535_s2] sm:$0xf]  ;;  %v196_v16 = vld [vmem:[%s537_s4 + $0x8] sm:$0xff]  ;;  %397 = vset.pattern.permute.xlu0 %v431_v24  ;;  %v433_v34 = vmov 1   ;;  %vm292_vm5 = vcmask 123904   ;;  %vm300_vm6 = vcmask 255104  }
   0x8   :  { %362 = vmatpush3.msra.mxu0 %v29_v4  ;;  %375 = vmatpush3.msk.msra.mxu1 %vm120_vm2, %v108_v10  ;;  %v195_v17 = vld [vmem:[%s537_s4] sm:$0xff]  ;;  %s434_s30 = smov [#allocation2]   ;;  %vm308_vm7 = vcmask 386304   ;;  %vm316_vm8 = vcmask 517504  }
   0x9   :  { %363 = vmatprep.subr.mxu0 %v428_v1  ;;  %379 = vmatprep.subr.mxu1 %v428_v1  ;;  %v333_v18 = vld [vmem:[%s536_s3] ss:$0 sm:$0xff]  ;;  %s324_s7 = sshll.u32 %s434_s30, 4  ;;  %s325_s7 = int_to_ptr.vmem [resolvable:$true] %s324_s7 }
   0xa   :  { %364 = vmatpush3.msra.mxu0 %v28_v5  ;;  %v336_v25 = vld [vmem:[%s538_s5] ss:$0 sm:$0xff]  ;;  %s406_s8 = scalar_lea.vmem %s325_s7, 32  ;;  %p411_p1 = scmp.lt.s32.totalorder %s325_s7, %s325_s7 }
   0xb   :  { %365 = vmatprep.subr.mxu0 %v428_v1  ;;  %v294_v38 = vld [vmem:[%s533_s0] sm:$0x3]  ;;  %p407_p0 = scmp.ne.s32.totalorder %s325_s7, %s406_s8  ;;  %p412_p2 = scmp.lt.s32.totalorder %s406_s8, %s406_s8 }
   0xc   :  { %366 = vmatpush3.msra.mxu0 %v27_v6  ;;  %v302_v39 = vld [vmem:[%s533_s0] sm:$0x3] }
   0xd   :  { %367 = vmatprep.subr.mxu0 %v428_v1  ;;  %v310_v40 = vld [vmem:[%s533_s0] sm:$0x3]  ;;  %p413_p3 = por %p412_p2, %p411_p1 }
   0xe   :  { %368 = vmatpush3.msra.mxu0 %v26_v7 }
   0xf   :  { %369 = vmatprep.subr.mxu0 %v428_v1  ;;  %p414_p4 = pnand %p413_p3, %p407_p0 }
  0x10   :  { %370 = vmatpush3.msra.mxu0 %v25_v8 }
  0x11   :  { %372 = vmatmul.mubr.msk.f32.vlgmr.msra.gmra.mxu0 %vm33_vm1, %v24_v9 }
  0xd1   :  { %v103_v11 = vpop.f32.mrf.mxu0 }
  0xd2   :  { %v107_v12 = vmul.f32 0.0625, %v103_v11 }
  0xd3   :  { %v373_v14 = vpop.f32.mrf.mxu0 }
  0xd4   :  { %377 = vmatmul.mubr.msk.f32.vlgmr.msra.gmra.mxu1 %vm116_vm3, %v107_v12 }
  0xd5   :  { %380 = vmatpush3.msra.mxu1 %v198_v13  ;;  %387 = vmatprep.mubr.msk.f32.mxu1 %vm429_vm0, %v428_v1 }
  0xd6   :  { %381 = vmatprep.subr.mxu1 %v428_v1 }
  0xd7   :  { %382 = vmatpush3.msra.mxu1 %v197_v15 }
  0xd8   :  { %383 = vmatprep.subr.mxu1 %v428_v1 }
  0xd9   :  { %384 = vmatpush3.msra.mxu1 %v196_v16 }
  0xda   :  { %385 = vmatprep.subr.mxu1 %v428_v1 }
  0xdb   :  { %386 = vmatpush3.msra.mxu1 %v195_v17 }
 0x194   :  { %v190_v19 = vpop.f32.mrf.mxu1 }
 0x195   :  { %v191_v20 = vadd.f32 %v333_v18, %v190_v19 }
 0x196   :  { %v378_v21 = vpop.f32.mrf.mxu1 }
 0x197   :  { %v194_v22 = vmax.f32 %v191_v20, 0.0 }
 0x199   :  { %388 = vmatmul.mubr.msk.f32.vlgmr.msra.gmra.mxu1 %vm206_vm4, %v194_v22 }
 0x259   :  { %v276_v26 = vpop.f32.mrf.mxu1 }
 0x25a   :  { %v277_v27 = vadd.f32 %v336_v25, %v276_v26 }
 0x25b   :  { %v389_v28 = vpop.f32.mrf.mxu1 }
 0x25c   :  { %v338_v29 = vmul.f32 -1.442695, %v277_v27 }
 0x25e   :  { %402 = vpow2.f32 %v338_v29 }
 0x26b   :  { %v403_v30 = vpop.eup %402 }
 0x26c   :  { %v283_v31 = vadd.f32 1.0, %v403_v30 }
 0x26e   :  { %404 = vrcp.f32 %v283_v31 }
 0x27b   :  { %v405_v32 = vpop.eup %404 }
 0x27c   :  { %304 = vperm.xlu1 %399, %v405_v32   ;;  %288 = vperm.xlu0 %397, %v405_v32  }
 0x280   :  { %400 = vset.pattern.permute.xlu1 %v432_v33  ;;  %398 = vset.pattern.permute.xlu0 %v433_v34 }
 0x281   :  { %312 = vperm.xlu1 %400, %v405_v32   ;;  %296 = vperm.xlu0 %398, %v405_v32  }
 0x285   :  { %401 = vset.pattern.permute.xlu0 %v432_v33 }
 0x2f7   :  { %v305_v35 = vpop.permute.xlu1 %304  ;;  %v289_v36 = vpop.permute.xlu0 %288 }
 0x2f8   :  { %v291_v37 = vmul.f32 %v289_v36, %v24_v9  ;;  %v307_v44 = vmul.f32 %v305_v35, %v302_v39 }
 0x2fa   :  { %293 = vst.msk [vmem:[#allocation2] sm:$0x3] %vm292_vm5, %v291_v37 }
 0x2fc   :  { %v313_v41 = vpop.permute.xlu1 %312  ;;  %v297_v42 = vpop.permute.xlu0 %296 }
 0x2fd   :  { %v299_v43 = vmul.f32 %v297_v42, %v294_v38  ;;  %v315_v45 = vmul.f32 %v313_v41, %v310_v40 }
 0x2ff   :  { %301 = vst.msk [vmem:[#allocation2] sm:$0x3] %vm300_vm6, %v299_v43 }
 0x300   :  { %309 = vst.msk [vmem:[#allocation2] sm:$0x3] %vm308_vm7, %v307_v44 }
 0x301   :  { %317 = vst.msk [vmem:[#allocation2] sm:$0x3] %vm316_vm8, %v315_v45 }
 0x302   :  { %417 = shalt.err (!%p414_p4)
}
 0x303   :  { %327 = dma.vmem_to_hbm [thread:$0]  %s325_s7, 32, %s539_s6, [#allocation3]  }
 0x304   :  { %426 = dma.done.wait [#allocation3], 32  }
 0x305   :  { %427 = vsyncadd [#allocation3], 4294967264 }
 0x306   :  { %331 = vsyncpa [#allocation3], 1 }

</bundles_post_ra>
